<compile_context>
chip_gen: v5e
topology: v5e:2x2
jax: 0.10.0
libtpu: 0.0.40
codegen_flags: <defaults>
</compile_context>

<pallas_src>
import functools

import jax
import jax.numpy as jnp
from jax.experimental import pallas as pl
from jax.experimental.pallas import tpu as pltpu

TILE_B = 8          # batch rows per grid step (sublane-aligned)
VALUE_LANES = 128   # lane-dense width for the value output (column 0 holds the value)


def _round_up(x, m):
    return (x + m - 1) // m * m


def _mlp_kernel(x_ref,
                w1c_ref, b1c_ref,      # fused layer-1 weight/bias of both towers
                w2_ref, b2_ref,        # policy layer-2
                wl_ref, bl_ref,        # policy logits head
                v2_ref, c2_ref,        # value layer-2
                wv_ref, cv_ref,        # value head row vector + bias
                logits_ref, value_ref,
                *, hidden):
    x = x_ref[...]                                    # [TB, Dp] f32
    cdt = w1c_ref.dtype                               # MXU-input dtype (f32 or bf16)

    # --- fused layer 1: one MXU weight push serves both towers ---
    h1g1 = jnp.tanh(
        jnp.dot(x.astype(cdt), w1c_ref[...], preferred_element_type=jnp.float32)
        + b1c_ref[...])
    h1 = h1g1[:, :hidden]                             # policy tower activations
    g1 = h1g1[:, hidden:2 * hidden]                   # value tower activations

    # --- policy tower ---
    h2 = jnp.tanh(
        jnp.dot(h1.astype(cdt), w2_ref[...], preferred_element_type=jnp.float32)
        + b2_ref[...])
    logits_ref[...] = (
        jnp.dot(h2.astype(cdt), wl_ref[...], preferred_element_type=jnp.float32)
        + bl_ref[...]).astype(logits_ref.dtype)

    # --- value tower ---
    g2 = jnp.tanh(
        jnp.dot(g1.astype(cdt), v2_ref[...], preferred_element_type=jnp.float32)
        + c2_ref[...])
    # width-1 head: VPU multiply + lane reduce instead of a padded MXU pass
    val = jnp.sum(g2 * wv_ref[...], axis=-1, keepdims=True)          # [TB, 1]
    value_ref[...] = (jnp.broadcast_to(val, value_ref.shape)
                      + cv_ref[...]).astype(value_ref.dtype)         # lane-dense write


def prepare_params(params, *, tile_b=TILE_B, weight_dtype=jnp.bfloat16):
    """Pad / pack / cast the weights ONCE; returns cached kernel operands."""
    D, H = params["w1"].shape
    A = params["wl"].shape[1]
    Dp = _round_up(D, 128)
    Hp = _round_up(H, 128)
    Ap = _round_up(A, 128)
    f32 = jnp.float32

    def pad_w(a, r, c):
        out = jnp.zeros((r, c), f32).at[:a.shape[0], :a.shape[1]].set(a.astype(f32))
        return out.astype(weight_dtype)

    def pad_b(a, c):
        row = jnp.zeros((1, c), f32).at[0, :a.shape[0]].set(a.astype(f32))
        return jnp.tile(row, (tile_b, 1))   # replicate over sublanes once (hoisted bcast)

    # fused layer-1 weight: [w1 | v1], each tower padded to Hp columns
    w1c = jnp.zeros((Dp, 2 * Hp), f32)
    w1c = w1c.at[:D, :H].set(params["w1"].astype(f32))
    w1c = w1c.at[:D, Hp:Hp + H].set(params["v1"].astype(f32))
    w1c = w1c.astype(weight_dtype)
    b1c = jnp.zeros((1, 2 * Hp), f32)
    b1c = b1c.at[0, :H].set(params["b1"].astype(f32))
    b1c = b1c.at[0, Hp:Hp + H].set(params["c1"].astype(f32))
    b1c = jnp.tile(b1c, (tile_b, 1))

    wv_row = jnp.zeros((1, Hp), f32).at[0, :H].set(params["wv"][:, 0].astype(f32))

    return dict(
        w1c=w1c, b1c=b1c,
        w2=pad_w(params["w2"], Hp, Hp), b2=pad_b(params["b2"], Hp),
        wl=pad_w(params["wl"], Hp, Ap), bl=pad_b(params["bl"], Ap),
        v2=pad_w(params["v2"], Hp, Hp), c2=pad_b(params["c2"], Hp),
        wv=jnp.tile(wv_row, (tile_b, 1)),                         # stays f32 (VPU path)
        cv=jnp.full((tile_b, VALUE_LANES), params["cv"][0], f32),
        meta=dict(D=D, H=H, A=A, Dp=Dp, Hp=Hp, Ap=Ap, tile_b=tile_b),
    )


def torch_fc_forward(obs, prepared):
    """obs: [B, D] float32.  Returns (logits [B, A], value [B])."""
    meta = prepared["meta"]
    B, D = obs.shape
    assert D == meta["D"]
    tile_b = meta["tile_b"]
    Dp, Hp, Ap, A = meta["Dp"], meta["Hp"], meta["Ap"], meta["A"]
    Bp = _round_up(max(B, tile_b), tile_b)

    # only the observation batch is padded per call; weights are already cached padded
    x_p = jnp.zeros((Bp, Dp), jnp.float32).at[:B, :D].set(obs.astype(jnp.float32))

    def fixed(shape):
        # constant block index -> fetched once, VMEM-resident across all batch tiles
        return pl.BlockSpec(shape, lambda i: (0, 0))

    in_specs = [
        pl.BlockSpec((tile_b, Dp), lambda i: (i, 0)),            # x
        fixed((Dp, 2 * Hp)), fixed((tile_b, 2 * Hp)),            # w1c, b1c
        fixed((Hp, Hp)), fixed((tile_b, Hp)),                    # w2, b2
        fixed((Hp, Ap)), fixed((tile_b, Ap)),                    # wl, bl
        fixed((Hp, Hp)), fixed((tile_b, Hp)),                    # v2, c2
        fixed((tile_b, Hp)), fixed((tile_b, VALUE_LANES)),       # wv, cv
    ]
    out_specs = (
        pl.BlockSpec((tile_b, Ap), lambda i: (i, 0)),
        pl.BlockSpec((tile_b, VALUE_LANES), lambda i: (i, 0)),
    )

    logits_p, value_p = pl.pallas_call(
        functools.partial(_mlp_kernel, hidden=Hp),
        out_shape=(
            jax.ShapeDtypeStruct((Bp, Ap), jnp.float32),
            jax.ShapeDtypeStruct((Bp, VALUE_LANES), jnp.float32),
        ),
        grid=(Bp // tile_b,),
        in_specs=in_specs,
        out_specs=out_specs,
        compiler_params=pltpu.CompilerParams(
            dimension_semantics=("parallel",)),
    )(x_p, prepared["w1c"], prepared["b1c"],
      prepared["w2"], prepared["b2"],
      prepared["wl"], prepared["bl"],
      prepared["v2"], prepared["c2"],
      prepared["wv"], prepared["cv"])

    logits = logits_p[:B, :A]
    value = value_p[:B, 0]          # value_function(): shape [B]
    return logits, value


def init_params(key, obs_dim, num_outputs, hidden=256):
    """Deterministic synthetic parameters (shapes match RLlib TorchFC defaults)."""
    keys = jax.random.split(key, 10)
    s = 0.05

    def mk(k, shp):
        return s * jax.random.normal(k, shp, jnp.float32)

    return dict(
        w1=mk(keys[0], (obs_dim, hidden)), b1=mk(keys[1], (hidden,)),
        w2=mk(keys[2], (hidden, hidden)),  b2=mk(keys[3], (hidden,)),
        wl=mk(keys[4], (hidden, num_outputs)), bl=jnp.zeros((num_outputs,), jnp.float32),
        v1=mk(keys[5], (obs_dim, hidden)), c1=mk(keys[6], (hidden,)),
        v2=mk(keys[7], (hidden, hidden)),  c2=mk(keys[8], (hidden,)),
        wv=mk(keys[9], (hidden, 1)),       cv=jnp.zeros((1,), jnp.float32),
    )


def reference_forward(obs, p):
    x = obs.astype(jnp.float32)
    h = jnp.tanh(x @ p["w1"] + p["b1"])
    h = jnp.tanh(h @ p["w2"] + p["b2"])
    logits = h @ p["wl"] + p["bl"]
    g = jnp.tanh(x @ p["v1"] + p["c1"])
    g = jnp.tanh(g @ p["v2"] + p["c2"])
    value = (g @ p["wv"] + p["cv"])[:, 0]
    return logits, value


if __name__ == "__main__":
    key = jax.random.PRNGKey(0)
    k_obs, k_par = jax.random.split(key)

    B = 2           # batch
    OBS_DIM = 52    # CAGE-challenge observation width
    NUM_OUT = 2     # hierarchical controller: choose between sub-agents
    HIDDEN = 256    # RLlib fcnet_hiddens default

    obs = jax.random.uniform(k_obs, (B, OBS_DIM), jnp.float32)
    params = init_params(k_par, OBS_DIM, NUM_OUT, HIDDEN)
    ref_logits, ref_value = reference_forward(obs, params)

    # exact path (f32 weights): bit-parity with the reference
    prep_f32 = prepare_params(params, weight_dtype=jnp.float32)
    logits, value = torch_fc_forward(obs, prep_f32)
    jax.block_until_ready((logits, value))
    assert logits.shape == (B, NUM_OUT) and value.shape == (B,)
    assert jnp.allclose(logits, ref_logits, atol=1e-5, rtol=1e-5)
    assert jnp.allclose(value, ref_value, atol=1e-5, rtol=1e-5)

    # fast path: cached bf16 weights (half the HBM weight traffic, native MXU rate)
    prep_bf16 = prepare_params(params, weight_dtype=jnp.bfloat16)
    logits_b, value_b = torch_fc_forward(obs, prep_bf16)
    jax.block_until_ready((logits_b, value_b))
    assert jnp.allclose(logits_b, ref_logits, atol=5e-2, rtol=5e-2)
    assert jnp.allclose(value_b, ref_value, atol=5e-2, rtol=5e-2)

    # larger stacked batch exercises the parallel batch grid (multiple tiles)
    B2 = 37
    obs2 = jax.random.uniform(jax.random.PRNGKey(1), (B2, OBS_DIM), jnp.float32)
    logits2, value2 = torch_fc_forward(obs2, prep_f32)
    jax.block_until_ready((logits2, value2))
    ref_l2, ref_v2 = reference_forward(obs2, params)
    assert logits2.shape == (B2, NUM_OUT) and value2.shape == (B2,)
    assert jnp.allclose(logits2, ref_l2, atol=1e-5, rtol=1e-5)
    assert jnp.allclose(value2, ref_v2, atol=1e-5, rtol=1e-5)

    print("KERNEL_OK")
</pallas_src>

<mosaic_0001>
module attributes {stable_mosaic.version = 11 : i64} {
  func.func @_mlp_kernel(%arg0: i32, %arg1: memref<8x128xf32, #tpu.memory_space<vmem>>, %arg2: memref<128x512xf32, #tpu.memory_space<vmem>>, %arg3: memref<8x512xf32, #tpu.memory_space<vmem>>, %arg4: memref<256x256xf32, #tpu.memory_space<vmem>>, %arg5: memref<8x256xf32, #tpu.memory_space<vmem>>, %arg6: memref<256x128xf32, #tpu.memory_space<vmem>>, %arg7: memref<8x128xf32, #tpu.memory_space<vmem>>, %arg8: memref<256x256xf32, #tpu.memory_space<vmem>>, %arg9: memref<8x256xf32, #tpu.memory_space<vmem>>, %arg10: memref<8x256xf32, #tpu.memory_space<vmem>>, %arg11: memref<8x128xf32, #tpu.memory_space<vmem>>, %arg12: memref<8x128xf32, #tpu.memory_space<vmem>>, %arg13: memref<8x128xf32, #tpu.memory_space<vmem>>) attributes {dimension_semantics = [#tpu.dimension_semantics<parallel>], iteration_bounds = array<i64: 1>, scalar_prefetch = 0 : i64, scratch_operands = 0 : i64, tpu.core_type = #tpu.core_type<tc>, window_params = [{transform_indices = @transform_0, window_bounds = array<i64: 8, 128>}, {pipeline_mode = #tpu.pipeline_mode<synchronous>, transform_indices = @transform_1, window_bounds = array<i64: 128, 512>}, {pipeline_mode = #tpu.pipeline_mode<synchronous>, transform_indices = @transform_2, window_bounds = array<i64: 8, 512>}, {pipeline_mode = #tpu.pipeline_mode<synchronous>, transform_indices = @transform_3, window_bounds = array<i64: 256, 256>}, {pipeline_mode = #tpu.pipeline_mode<synchronous>, transform_indices = @transform_4, window_bounds = array<i64: 8, 256>}, {pipeline_mode = #tpu.pipeline_mode<synchronous>, transform_indices = @transform_5, window_bounds = array<i64: 256, 128>}, {pipeline_mode = #tpu.pipeline_mode<synchronous>, transform_indices = @transform_6, window_bounds = array<i64: 8, 128>}, {pipeline_mode = #tpu.pipeline_mode<synchronous>, transform_indices = @transform_7, window_bounds = array<i64: 256, 256>}, {pipeline_mode = #tpu.pipeline_mode<synchronous>, transform_indices = @transform_8, window_bounds = array<i64: 8, 256>}, {pipeline_mode = #tpu.pipeline_mode<synchronous>, transform_indices = @transform_9, window_bounds = array<i64: 8, 256>}, {pipeline_mode = #tpu.pipeline_mode<synchronous>, transform_indices = @transform_10, window_bounds = array<i64: 8, 128>}, {transform_indices = @transform_11, window_bounds = array<i64: 8, 128>}, {transform_indices = @transform_12, window_bounds = array<i64: 8, 128>}]} {
    %c0 = arith.constant 0 : index
    %c0_0 = arith.constant 0 : index
    %0 = vector.load %arg1[%c0, %c0_0] : memref<8x128xf32, #tpu.memory_space<vmem>>, vector<8x128xf32>
    %c0_1 = arith.constant 0 : index
    %c0_2 = arith.constant 0 : index
    %1 = vector.load %arg2[%c0_1, %c0_2] : memref<128x512xf32, #tpu.memory_space<vmem>>, vector<128x512xf32>
    %cst = arith.constant dense<0.000000e+00> : vector<8x512xf32>
    %2 = tpu.matmul %0, %1, %cst {dimension_numbers = #tpu.dot_dimension_numbers<[1], [0], [0], [1], [0, 0, 1, 1], [], []>} : vector<8x128xf32>, vector<128x512xf32>, vector<8x512xf32> -> vector<8x512xf32>
    %c0_3 = arith.constant 0 : index
    %c0_4 = arith.constant 0 : index
    %3 = vector.load %arg3[%c0_3, %c0_4] : memref<8x512xf32, #tpu.memory_space<vmem>>, vector<8x512xf32>
    %4 = arith.addf %2, %3 : vector<8x512xf32>
    %5 = math.tanh %4 : vector<8x512xf32>
    %6 = vector.extract_strided_slice %5 {offsets = [0, 0], sizes = [8, 256], strides = [1, 1]} : vector<8x512xf32> to vector<8x256xf32>
    %7 = vector.extract_strided_slice %5 {offsets = [0, 256], sizes = [8, 256], strides = [1, 1]} : vector<8x512xf32> to vector<8x256xf32>
    %c0_5 = arith.constant 0 : index
    %c0_6 = arith.constant 0 : index
    %8 = vector.load %arg4[%c0_5, %c0_6] : memref<256x256xf32, #tpu.memory_space<vmem>>, vector<256x256xf32>
    %cst_7 = arith.constant dense<0.000000e+00> : vector<8x256xf32>
    %9 = tpu.matmul %6, %8, %cst_7 {dimension_numbers = #tpu.dot_dimension_numbers<[1], [0], [0], [1], [0, 0, 1, 1], [], []>} : vector<8x256xf32>, vector<256x256xf32>, vector<8x256xf32> -> vector<8x256xf32>
    %c0_8 = arith.constant 0 : index
    %c0_9 = arith.constant 0 : index
    %10 = vector.load %arg5[%c0_8, %c0_9] : memref<8x256xf32, #tpu.memory_space<vmem>>, vector<8x256xf32>
    %11 = arith.addf %9, %10 : vector<8x256xf32>
    %12 = math.tanh %11 : vector<8x256xf32>
    %c0_10 = arith.constant 0 : index
    %c0_11 = arith.constant 0 : index
    %13 = vector.load %arg6[%c0_10, %c0_11] : memref<256x128xf32, #tpu.memory_space<vmem>>, vector<256x128xf32>
    %cst_12 = arith.constant dense<0.000000e+00> : vector<8x128xf32>
    %14 = tpu.matmul %12, %13, %cst_12 {dimension_numbers = #tpu.dot_dimension_numbers<[1], [0], [0], [1], [0, 0, 1, 1], [], []>} : vector<8x256xf32>, vector<256x128xf32>, vector<8x128xf32> -> vector<8x128xf32>
    %c0_13 = arith.constant 0 : index
    %c0_14 = arith.constant 0 : index
    %15 = vector.load %arg7[%c0_13, %c0_14] : memref<8x128xf32, #tpu.memory_space<vmem>>, vector<8x128xf32>
    %16 = arith.addf %14, %15 : vector<8x128xf32>
    %c0_15 = arith.constant 0 : index
    %c0_16 = arith.constant 0 : index
    %17 = vector.load %arg12[%c0_15, %c0_16] : memref<8x128xf32, #tpu.memory_space<vmem>>, vector<8x128xf32>
    tpu.vector_store %arg12[%c0_15, %c0_16], %16 {strides = array<i32>} : memref<8x128xf32, #tpu.memory_space<vmem>>, vector<8x128xf32>,
    %c0_17 = arith.constant 0 : index
    %c0_18 = arith.constant 0 : index
    %18 = vector.load %arg8[%c0_17, %c0_18] : memref<256x256xf32, #tpu.memory_space<vmem>>, vector<256x256xf32>
    %cst_19 = arith.constant dense<0.000000e+00> : vector<8x256xf32>
    %19 = tpu.matmul %7, %18, %cst_19 {dimension_numbers = #tpu.dot_dimension_numbers<[1], [0], [0], [1], [0, 0, 1, 1], [], []>} : vector<8x256xf32>, vector<256x256xf32>, vector<8x256xf32> -> vector<8x256xf32>
    %c0_20 = arith.constant 0 : index
    %c0_21 = arith.constant 0 : index
    %20 = vector.load %arg9[%c0_20, %c0_21] : memref<8x256xf32, #tpu.memory_space<vmem>>, vector<8x256xf32>
    %21 = arith.addf %19, %20 : vector<8x256xf32>
    %22 = math.tanh %21 : vector<8x256xf32>
    %c0_22 = arith.constant 0 : index
    %c0_23 = arith.constant 0 : index
    %23 = vector.load %arg10[%c0_22, %c0_23] : memref<8x256xf32, #tpu.memory_space<vmem>>, vector<8x256xf32>
    %24 = arith.mulf %22, %23 : vector<8x256xf32>
    %cst_24 = arith.constant dense<0.000000e+00> : vector<8xf32>
    %25 = vector.multi_reduction <add>, %24, %cst_24 [1] : vector<8x256xf32> to vector<8xf32>
    %26 = vector.shape_cast %25 : vector<8xf32> to vector<8x1xf32>
    %27 = vector.shape_cast %26 : vector<8x1xf32> to vector<8x1xf32>
    %28 = vector.broadcast %27 : vector<8x1xf32> to vector<8x128xf32>
    %c0_25 = arith.constant 0 : index
    %c0_26 = arith.constant 0 : index
    %29 = vector.load %arg11[%c0_25, %c0_26] : memref<8x128xf32, #tpu.memory_space<vmem>>, vector<8x128xf32>
    %30 = arith.addf %28, %29 : vector<8x128xf32>
    %c0_27 = arith.constant 0 : index
    %c0_28 = arith.constant 0 : index
    %31 = vector.load %arg13[%c0_27, %c0_28] : memref<8x128xf32, #tpu.memory_space<vmem>>, vector<8x128xf32>
    tpu.vector_store %arg13[%c0_27, %c0_28], %30 {strides = array<i32>} : memref<8x128xf32, #tpu.memory_space<vmem>>, vector<8x128xf32>,
    return
  }
  func.func @transform_0(%arg0: i32) -> (i32, i32) {
    %c0_i32 = arith.constant 0 : i32
    %c0_i32_0 = arith.constant 0 : i32
    return %arg0, %c0_i32 : i32, i32
  }
  func.func @transform_1(%arg0: i32) -> (i32, i32) {
    %c0_i32 = arith.constant 0 : i32
    %c0_i32_0 = arith.constant 0 : i32
    %c0_i32_1 = arith.constant 0 : i32
    return %c0_i32, %c0_i32_0 : i32, i32
  }
  func.func @transform_2(%arg0: i32) -> (i32, i32) {
    %c0_i32 = arith.constant 0 : i32
    %c0_i32_0 = arith.constant 0 : i32
    %c0_i32_1 = arith.constant 0 : i32
    return %c0_i32, %c0_i32_0 : i32, i32
  }
  func.func @transform_3(%arg0: i32) -> (i32, i32) {
    %c0_i32 = arith.constant 0 : i32
    %c0_i32_0 = arith.constant 0 : i32
    %c0_i32_1 = arith.constant 0 : i32
    return %c0_i32, %c0_i32_0 : i32, i32
  }
  func.func @transform_4(%arg0: i32) -> (i32, i32) {
    %c0_i32 = arith.constant 0 : i32
    %c0_i32_0 = arith.constant 0 : i32
    %c0_i32_1 = arith.constant 0 : i32
    return %c0_i32, %c0_i32_0 : i32, i32
  }
  func.func @transform_5(%arg0: i32) -> (i32, i32) {
    %c0_i32 = arith.constant 0 : i32
    %c0_i32_0 = arith.constant 0 : i32
    %c0_i32_1 = arith.constant 0 : i32
    return %c0_i32, %c0_i32_0 : i32, i32
  }
  func.func @transform_6(%arg0: i32) -> (i32, i32) {
    %c0_i32 = arith.constant 0 : i32
    %c0_i32_0 = arith.constant 0 : i32
    %c0_i32_1 = arith.constant 0 : i32
    return %c0_i32, %c0_i32_0 : i32, i32
  }
  func.func @transform_7(%arg0: i32) -> (i32, i32) {
    %c0_i32 = arith.constant 0 : i32
    %c0_i32_0 = arith.constant 0 : i32
    %c0_i32_1 = arith.constant 0 : i32
    return %c0_i32, %c0_i32_0 : i32, i32
  }
  func.func @transform_8(%arg0: i32) -> (i32, i32) {
    %c0_i32 = arith.constant 0 : i32
    %c0_i32_0 = arith.constant 0 : i32
    %c0_i32_1 = arith.constant 0 : i32
    return %c0_i32, %c0_i32_0 : i32, i32
  }
  func.func @transform_9(%arg0: i32) -> (i32, i32) {
    %c0_i32 = arith.constant 0 : i32
    %c0_i32_0 = arith.constant 0 : i32
    %c0_i32_1 = arith.constant 0 : i32
    return %c0_i32, %c0_i32_0 : i32, i32
  }
  func.func @transform_10(%arg0: i32) -> (i32, i32) {
    %c0_i32 = arith.constant 0 : i32
    %c0_i32_0 = arith.constant 0 : i32
    %c0_i32_1 = arith.constant 0 : i32
    return %c0_i32, %c0_i32_0 : i32, i32
  }
  func.func @transform_11(%arg0: i32) -> (i32, i32) {
    %c0_i32 = arith.constant 0 : i32
    %c0_i32_0 = arith.constant 0 : i32
    return %arg0, %c0_i32 : i32, i32
  }
  func.func @transform_12(%arg0: i32) -> (i32, i32) {
    %c0_i32 = arith.constant 0 : i32
    %c0_i32_0 = arith.constant 0 : i32
    return %arg0, %c0_i32 : i32, i32
  }
}

</mosaic_0001>

<bundles_post_ra>
// kernel: tpu_custom_call.1
= control target key start
LH: loop header
LB: loop body
LE: loop exit
PB: predicated region body
PF: predicated region fallthrough
CT: control target
= control target key end

     0   :  { %18 = vsyncpa [#allocation3], 0  ;;  %s1223_s0 = inlined_call_operand.hbm [shape: f32[8,128], index: 0, kind: input, shape index: {}]   ;;  %s1224_s1 = inlined_call_operand.hbm [shape: f32[128,512], index: 1, kind: input, shape index: {}]   ;;  %s1225_s2 = inlined_call_operand.hbm [shape: f32[8,512], index: 2, kind: input, shape index: {}]   ;;  %s1226_s3 = inlined_call_operand.hbm [shape: f32[256,256], index: 3, kind: input, shape index: {}]   ;;  %s1227_s4 = inlined_call_operand.hbm [shape: f32[8,256], index: 4, kind: input, shape index: {}]   ;;  %s1228_s5 = inlined_call_operand.hbm [shape: f32[256,128], index: 5, kind: input, shape index: {}]   ;;  %s1229_s6 = inlined_call_operand.hbm [shape: f32[8,128], index: 6, kind: input, shape index: {}]   ;;  %s1230_s7 = inlined_call_operand.hbm [shape: f32[256,256], index: 7, kind: input, shape index: {}]   ;;  %s1231_s8 = inlined_call_operand.hbm [shape: f32[8,256], index: 8, kind: input, shape index: {}]   ;;  %s1232_s9 = inlined_call_operand.hbm [shape: f32[8,256], index: 9, kind: input, shape index: {}]   ;;  %s1233_s10 = inlined_call_operand.vmem [shape: f32[8,128], index: 10, kind: input, shape index: {}]   ;;  %s1234_s11 = inlined_call_operand.hbm [shape: f32[8,128], index: 11, kind: output, shape index: {0}]   ;;  %s1235_s12 = inlined_call_operand.hbm [shape: f32[8,128], index: 12, kind: output, shape index: {1}]  }
   0x1   :  { %19 = vsyncpa [#allocation6], 0 }
   0x2   :  { %20 = vsyncpa [#allocation9], 0 }
   0x3   :  { %21 = vsyncpa [#allocation12], 0 }
   0x4   :  { %22 = vsyncpa [#allocation15], 0 }
   0x5   :  { %23 = vsyncpa [#allocation18], 0 }
   0x6   :  { %24 = vsyncpa [#allocation4], 0  ;;  %s41_s23 = sshll.u32 %s1224_s1, 4  ;;  %s42_s23 = int_to_ptr.hbm [resolvable:$true] %s41_s23 }
   0x7   :  { %25 = vsyncpa [#allocation21], 0  ;;  %s1095_s24 = smov [#allocation5]   ;;  %s65_s28 = sshll.u32 %s1226_s3, 4  ;;  %s66_s28 = int_to_ptr.hbm [resolvable:$true] %s65_s28 }
   0x8   :  { %s43_s25 = sshll.u32 %s1095_s24, 4  ;;  %s1096_s29 = smov 512   ;;  %s44_s25 = int_to_ptr.vmem [resolvable:$true] %s43_s25 }
   0x9   :  { %s1097_s30 = smov 32   ;;  %s1098_s13 = smov [#allocation8]  }
   0xa   :  { %49 = dma.hbm_to_vmem [thread:$0]  %s42_s23, 8192, %s44_s25, [#allocation6], %s1096_s29, %s1096_s29, %s1097_s30  }
   0xb   :  { %s67_s14 = sshll.u32 %s1098_s13, 4  ;;  %s1099_s15 = smov 256   ;;  %s68_s14 = int_to_ptr.vmem [resolvable:$true] %s67_s14 }
   0xc   :  { %s1100_s16 = smov 16   ;;  %s89_s18 = sshll.u32 %s1228_s5, 4  ;;  %s90_s18 = int_to_ptr.hbm [resolvable:$true] %s89_s18 }
   0xd   :  { %73 = dma.hbm_to_vmem [thread:$0]  %s66_s28, 8192, %s68_s14, [#allocation9], %s1099_s15, %s1099_s15, %s1100_s16  }
   0xe   :  { %s1101_s19 = smov [#allocation11]   ;;  %s113_s22 = sshll.u32 %s1230_s7, 4  ;;  %s114_s22 = int_to_ptr.hbm [resolvable:$true] %s113_s22 }
   0xf   :  { %s91_s20 = sshll.u32 %s1101_s19, 4  ;;  %s1102_s23 = smov 128   ;;  %s92_s20 = int_to_ptr.vmem [resolvable:$true] %s91_s20 }
  0x10   :  { %s1103_s24 = smov 8   ;;  %s1104_s25 = smov [#allocation14]  }
  0x11   :  { %97 = dma.hbm_to_vmem [thread:$0]  %s90_s18, 4096, %s92_s20, [#allocation12], %s1102_s23, %s1102_s23, %s1103_s24  }
  0x12   :  { %s115_s26 = sshll.u32 %s1104_s25, 4  ;;  %s31_s29 = sshll.u32 %s1223_s0, 4  ;;  %s116_s26 = int_to_ptr.vmem [resolvable:$true] %s115_s26  ;;  %s32_s29 = int_to_ptr.hbm [resolvable:$true] %s31_s29 }
  0x13   :  { %121 = dma.hbm_to_vmem [thread:$0]  %s114_s22, 8192, %s116_s26, [#allocation15], %s1099_s15, %s1099_s15, %s1100_s16  }
  0x14   :  { %s55_s13 = sshll.u32 %s1225_s2, 4  ;;  %s1105_s14 = smov [#allocation2]   ;;  %s56_s13 = int_to_ptr.hbm [resolvable:$true] %s55_s13 }
  0x15   :  { %s33_s1 = sshll.u32 %s1105_s14, 4  ;;  %s1106_s7 = smov [#allocation7]   ;;  %s34_s1 = int_to_ptr.vmem [resolvable:$true] %s33_s1 }
  0x16   :  { %36 = dma.hbm_to_vmem [thread:$0]  %s32_s29, 128, %s34_s1, [#allocation3]  }
  0x17   :  { %s57_s17 = sshll.u32 %s1106_s7, 4  ;;  %s79_s20 = sshll.u32 %s1227_s4, 4  ;;  %s58_s17 = int_to_ptr.vmem [resolvable:$true] %s57_s17  ;;  %s80_s20 = int_to_ptr.hbm [resolvable:$true] %s79_s20 }
  0x18   :  { %60 = dma.hbm_to_vmem [thread:$0]  %s56_s13, 512, %s58_s17, [#allocation6]  }
  0x19   :  { %s103_s16 = sshll.u32 %s1229_s6, 4  ;;  %s1107_s21 = smov [#allocation10]   ;;  %s104_s16 = int_to_ptr.hbm [resolvable:$true] %s103_s16 }
  0x1a   :  { %s81_s2 = sshll.u32 %s1107_s21, 4  ;;  %s1108_s3 = smov [#allocation13]   ;;  %s82_s2 = int_to_ptr.vmem [resolvable:$true] %s81_s2 }
  0x1b   :  { %84 = dma.hbm_to_vmem [thread:$0]  %s80_s20, 256, %s82_s2, [#allocation9]  }
  0x1c   :  { %s105_s22 = sshll.u32 %s1108_s3, 4  ;;  %s127_s25 = sshll.u32 %s1231_s8, 4  ;;  %s106_s22 = int_to_ptr.vmem [resolvable:$true] %s105_s22  ;;  %s128_s25 = int_to_ptr.hbm [resolvable:$true] %s127_s25 }
  0x1d   :  { %108 = dma.hbm_to_vmem [thread:$0]  %s104_s16, 128, %s106_s22, [#allocation12]  }
  0x1e   :  { %s138_s27 = sshll.u32 %s1232_s9, 4  ;;  %s1109_s28 = smov [#allocation16]   ;;  %s139_s27 = int_to_ptr.hbm [resolvable:$true] %s138_s27 }
  0x1f   :  { %s129_s6 = sshll.u32 %s1109_s28, 4  ;;  %s1110_s29 = smov [#allocation17]   ;;  %s130_s6 = int_to_ptr.vmem [resolvable:$true] %s129_s6 }
  0x20   :  { %132 = dma.hbm_to_vmem [thread:$0]  %s128_s25, 256, %s130_s6, [#allocation15]  }
  0x21   :  { %s140_s5 = sshll.u32 %s1110_s29, 4  ;;  %s141_s5 = int_to_ptr.vmem [resolvable:$true] %s140_s5 }
  0x22   :  { %143 = dma.hbm_to_vmem [thread:$0]  %s139_s27, 256, %s141_s5, [#allocation18]  }
  0x23   :  { %1079 = dma.done.wait [#allocation3], 128  }
  0x24   :  { %1080 = vsyncadd [#allocation3], 4294967168 }
  0x25   :  { %1081 = dma.done.wait [#allocation6], 8704  }
  0x26   :  { %1082 = vsyncadd [#allocation6], 4294958592 }
  0x27   :  { %1083 = dma.done.wait [#allocation9], 8448  }
  0x28   :  { %1084 = vsyncadd [#allocation9], 4294958848 }
  0x29   :  { %1085 = dma.done.wait [#allocation12], 4224  }
  0x2a   :  { %1086 = vsyncadd [#allocation12], 4294963072 }
  0x2b   :  { %1087 = dma.done.wait [#allocation15], 8448  }
  0x2c   :  { %1088 = vsyncadd [#allocation15], 4294958848 }
  0x2d   :  { %1089 = dma.done.wait [#allocation18], 256  }
  0x2e   :  { %1090 = vsyncadd [#allocation18], 4294967040  ;;  %v247_v0 = vld [vmem:[#allocation5 + $0x1e0] sm:$0xff]  ;;  %v248_v2 = vld [vmem:[#allocation5 + $0x1e8] sm:$0xff]  ;;  %s1111_s8 = smov [#allocation19]   ;;  %s726_s14 = sshll.u32 %s1234_s11, 4  ;;  %s727_s14 = int_to_ptr.hbm [resolvable:$true] %s726_s14 }
  0x2f   :  { %v243_v1 = vld [vmem:[#allocation5 + $0x1c0] sm:$0xff]  ;;  %255 = vmatpush.msra.mxu0 %v247_v0  ;;  %275 = vmatpush.msra.mxu1 %v248_v2  ;;  %v244_v3 = vld [vmem:[#allocation5 + $0x1c8] sm:$0xff]  ;;  %v249_v14 = vld [vmem:[#allocation5 + $0x1f0] sm:$0xff]  ;;  %s724_s9 = sshll.u32 %s1111_s8, 4  ;;  %s1112_s17 = smov [#allocation20]   ;;  %s725_s9 = int_to_ptr.vmem [resolvable:$true] %s724_s9 }
  0x30   :  { %v239_v4 = vld [vmem:[#allocation5 + $0x1a0] sm:$0xff]  ;;  %v240_v5 = vld [vmem:[#allocation5 + $0x1a8] sm:$0xff]  ;;  %v245_v15 = vld [vmem:[#allocation5 + $0x1d0] sm:$0xff]  ;;  %295 = vmatpush.msra.mxu2 %v249_v14  ;;  %s735_s18 = sshll.u32 %s1112_s17, 4  ;;  %s737_s11 = sshll.u32 %s1235_s12, 4  ;;  %s736_s18 = int_to_ptr.vmem [resolvable:$true] %s735_s18  ;;  %s738_s11 = int_to_ptr.hbm [resolvable:$true] %s737_s11 }
  0x31   :  { %256 = vmatpush.msra.mxu0 %v243_v1  ;;  %276 = vmatpush.msra.mxu1 %v244_v3  ;;  %v235_v6 = vld [vmem:[#allocation5 + $0x180] sm:$0xff]  ;;  %v236_v7 = vld [vmem:[#allocation5 + $0x188] sm:$0xff]  ;;  %v250_v16 = vld [vmem:[#allocation5 + $0x1f8] sm:$0xff] }
  0x32   :  { %v231_v8 = vld [vmem:[#allocation5 + $0x160] sm:$0xff]  ;;  %v232_v9 = vld [vmem:[#allocation5 + $0x168] sm:$0xff]  ;;  %315 = vmatpush.msra.mxu3 %v250_v16  ;;  %v246_v19 = vld [vmem:[#allocation5 + $0x1d8] sm:$0xff]  ;;  %296 = vmatpush.msra.mxu2 %v245_v15 }
  0x33   :  { %257 = vmatpush.msra.mxu0 %v239_v4  ;;  %277 = vmatpush.msra.mxu1 %v240_v5  ;;  %v227_v10 = vld [vmem:[#allocation5 + $0x140] sm:$0xff]  ;;  %v228_v11 = vld [vmem:[#allocation5 + $0x148] sm:$0xff]  ;;  %v241_v20 = vld [vmem:[#allocation5 + $0x1b0] sm:$0xff] }
  0x34   :  { %v223_v12 = vld [vmem:[#allocation5 + $0x120] sm:$0xff]  ;;  %v224_v13 = vld [vmem:[#allocation5 + $0x128] sm:$0xff]  ;;  %v242_v21 = vld [vmem:[#allocation5 + $0x1b8] sm:$0xff]  ;;  %316 = vmatpush.msra.mxu3 %v246_v19  ;;  %297 = vmatpush.msra.mxu2 %v241_v20 }
  0x35   :  { %258 = vmatpush.msra.mxu0 %v235_v6  ;;  %278 = vmatpush.msra.mxu1 %v236_v7  ;;  %v219_v17 = vld [vmem:[#allocation5 + $0x100] sm:$0xff]  ;;  %v220_v18 = vld [vmem:[#allocation5 + $0x108] sm:$0xff]  ;;  %v237_v24 = vld [vmem:[#allocation5 + $0x190] sm:$0xff] }
  0x36   :  { %v215_v22 = vld [vmem:[#allocation5 + $0xe0] sm:$0xff]  ;;  %v216_v23 = vld [vmem:[#allocation5 + $0xe8] sm:$0xff]  ;;  %v238_v25 = vld [vmem:[#allocation5 + $0x198] sm:$0xff]  ;;  %317 = vmatpush.msra.mxu3 %v242_v21  ;;  %298 = vmatpush.msra.mxu2 %v237_v24 }
  0x37   :  { %259 = vmatpush.msra.mxu0 %v231_v8  ;;  %279 = vmatpush.msra.mxu1 %v232_v9  ;;  %v211_v26 = vld [vmem:[#allocation5 + $0xc0] sm:$0xff]  ;;  %v212_v27 = vld [vmem:[#allocation5 + $0xc8] sm:$0xff]  ;;  %v233_v28 = vld [vmem:[#allocation5 + $0x170] sm:$0xff] }
  0x38   :  { %v234_v29 = vld [vmem:[#allocation5 + $0x178] sm:$0xff]  ;;  %v207_v30 = vld [vmem:[#allocation5 + $0xa0] sm:$0xff]  ;;  %v208_v31 = vld [vmem:[#allocation5 + $0xa8] sm:$0xff]  ;;  %318 = vmatpush.msra.mxu3 %v238_v25  ;;  %299 = vmatpush.msra.mxu2 %v233_v28 }
  0x39   :  { %260 = vmatpush.msra.mxu0 %v227_v10  ;;  %280 = vmatpush.msra.mxu1 %v228_v11  ;;  %v229_v32 = vld [vmem:[#allocation5 + $0x150] sm:$0xff]  ;;  %v230_v33 = vld [vmem:[#allocation5 + $0x158] sm:$0xff]  ;;  %v203_v34 = vld [vmem:[#allocation5 + $0x80] sm:$0xff] }
  0x3a   :  { %v204_v35 = vld [vmem:[#allocation5 + $0x88] sm:$0xff]  ;;  %319 = vmatpush.msra.mxu3 %v234_v29  ;;  %v225_v36 = vld [vmem:[#allocation5 + $0x130] sm:$0xff]  ;;  %v226_v37 = vld [vmem:[#allocation5 + $0x138] sm:$0xff]  ;;  %300 = vmatpush.msra.mxu2 %v229_v32 }
  0x3b   :  { %261 = vmatpush.msra.mxu0 %v223_v12  ;;  %281 = vmatpush.msra.mxu1 %v224_v13  ;;  %v199_v38 = vld [vmem:[#allocation5 + $0x60] sm:$0xff]  ;;  %v200_v39 = vld [vmem:[#allocation5 + $0x68] sm:$0xff]  ;;  %v221_v40 = vld [vmem:[#allocation5 + $0x110] sm:$0xff] }
  0x3c   :  { %320 = vmatpush.msra.mxu3 %v230_v33  ;;  %v222_v41 = vld [vmem:[#allocation5 + $0x118] sm:$0xff]  ;;  %v195_v42 = vld [vmem:[#allocation5 + $0x40] sm:$0xff]  ;;  %v196_v43 = vld [vmem:[#allocation5 + $0x48] sm:$0xff]  ;;  %301 = vmatpush.msra.mxu2 %v225_v36 }
  0x3d   :  { %262 = vmatpush.msra.mxu0 %v219_v17  ;;  %282 = vmatpush.msra.mxu1 %v220_v18  ;;  %v217_v44 = vld [vmem:[#allocation5 + $0xf0] sm:$0xff]  ;;  %v218_v45 = vld [vmem:[#allocation5 + $0xf8] sm:$0xff]  ;;  %v191_v46 = vld [vmem:[#allocation5 + $0x20] sm:$0xff] }
  0x3e   :  { %321 = vmatpush.msra.mxu3 %v226_v37  ;;  %v192_v47 = vld [vmem:[#allocation5 + $0x28] sm:$0xff]  ;;  %302 = vmatpush.msra.mxu2 %v221_v40  ;;  %v213_v48 = vld [vmem:[#allocation5 + $0xd0] sm:$0xff]  ;;  %v214_v49 = vld [vmem:[#allocation5 + $0xd8] sm:$0xff] }
  0x3f   :  { %263 = vmatpush.msra.mxu0 %v215_v22  ;;  %283 = vmatpush.msra.mxu1 %v216_v23  ;;  %v187_v50 = vld [vmem:[#allocation5] sm:$0xff]  ;;  %v188_v51 = vld [vmem:[#allocation5 + $0x8] sm:$0xff]  ;;  %v1208_v52 = vld [vmem:[#allocation2] sm:$0xff] }
  0x40   :  { %322 = vmatpush.msra.mxu3 %v222_v41  ;;  %303 = vmatpush.msra.mxu2 %v217_v44  ;;  %v209_v53 = vld [vmem:[#allocation5 + $0xb0] sm:$0xff]  ;;  %v210_v54 = vld [vmem:[#allocation5 + $0xb8] sm:$0xff]  ;;  %v367_v59 = vld [vmem:[#allocation8 + $0xe0] sm:$0xff] }
  0x41   :  { %264 = vmatpush.msra.mxu0 %v211_v26  ;;  %284 = vmatpush.msra.mxu1 %v212_v27  ;;  %v369_v55 = vld [vmem:[#allocation8 + $0xf0] sm:$0xff]  ;;  %v206_v58 = vld [vmem:[#allocation5 + $0x98] sm:$0xff]  ;;  %v399_v60 = vld [vmem:[#allocation8 + $0x1e0] sm:$0xff] }
  0x42   :  { %323 = vmatpush.msra.mxu3 %v218_v45  ;;  %304 = vmatpush.msra.mxu2 %v213_v48  ;;  %v401_v56 = vld [vmem:[#allocation8 + $0x1f0] sm:$0xff]  ;;  %v202_v62 = vld [vmem:[#allocation5 + $0x78] sm:$0xff]  ;;  %v363_v3 = vld [vmem:[#allocation8 + $0xc0] sm:$0xff] }
  0x43   :  { %265 = vmatpush.msra.mxu0 %v207_v30  ;;  %285 = vmatpush.msra.mxu1 %v208_v31  ;;  %v205_v57 = vld [vmem:[#allocation5 + $0x90] sm:$0xff]  ;;  %v198_v2 = vld [vmem:[#allocation5 + $0x58] sm:$0xff]  ;;  %v395_v4 = vld [vmem:[#allocation8 + $0x1c0] sm:$0xff] }
  0x44   :  { %324 = vmatpush.msra.mxu3 %v214_v49  ;;  %305 = vmatpush.msra.mxu2 %v209_v53  ;;  %v201_v61 = vld [vmem:[#allocation5 + $0x70] sm:$0xff]  ;;  %v194_v6 = vld [vmem:[#allocation5 + $0x38] sm:$0xff]  ;;  %v359_v13 = vld [vmem:[#allocation8 + $0xa0] sm:$0xff] }
  0x45   :  { %266 = vmatpush.msra.mxu0 %v203_v34  ;;  %286 = vmatpush.msra.mxu1 %v204_v35  ;;  %v365_v63 = vld [vmem:[#allocation8 + $0xd0] sm:$0xff]  ;;  %v190_v10 = vld [vmem:[#allocation5 + $0x18] sm:$0xff]  ;;  %v391_v14 = vld [vmem:[#allocation8 + $0x1a0] sm:$0xff] }
  0x46   :  { %325 = vmatpush.msra.mxu3 %v210_v54  ;;  %306 = vmatpush.msra.mxu2 %v205_v57  ;;  %v397_v0 = vld [vmem:[#allocation8 + $0x1d0] sm:$0xff]  ;;  %v370_v11 = vld [vmem:[#allocation8 + $0xf8] sm:$0xff]  ;;  %v368_v15 = vld [vmem:[#allocation8 + $0xe8] sm:$0xff] }
  0x47   :  { %267 = vmatpush.msra.mxu0 %v199_v38  ;;  %287 = vmatpush.msra.mxu1 %v200_v39  ;;  %v197_v1 = vld [vmem:[#allocation5 + $0x50] sm:$0xff]  ;;  %v402_v12 = vld [vmem:[#allocation8 + $0x1f8] sm:$0xff]  ;;  %v400_v16 = vld [vmem:[#allocation8 + $0x1e8] sm:$0xff] }
  0x48   :  { %326 = vmatpush.msra.mxu3 %v206_v58  ;;  %307 = vmatpush.msra.mxu2 %v201_v61  ;;  %v193_v5 = vld [vmem:[#allocation5 + $0x30] sm:$0xff]  ;;  %v366_v19 = vld [vmem:[#allocation8 + $0xd8] sm:$0xff]  ;;  %v355_v21 = vld [vmem:[#allocation8 + $0x80] sm:$0xff] }
  0x49   :  { %268 = vmatpush.msra.mxu0 %v195_v42  ;;  %288 = vmatpush.msra.mxu1 %v196_v43  ;;  %v361_v7 = vld [vmem:[#allocation8 + $0xb0] sm:$0xff]  ;;  %v398_v20 = vld [vmem:[#allocation8 + $0x1d8] sm:$0xff]  ;;  %v387_v22 = vld [vmem:[#allocation8 + $0x180] sm:$0xff] }
  0x4a   :  { %327 = vmatpush.msra.mxu3 %v202_v62  ;;  %308 = vmatpush.msra.mxu2 %v197_v1  ;;  %v393_v8 = vld [vmem:[#allocation8 + $0x1b0] sm:$0xff]  ;;  %v364_v23 = vld [vmem:[#allocation8 + $0xc8] sm:$0xff]  ;;  %v362_v27 = vld [vmem:[#allocation8 + $0xb8] sm:$0xff] }
  0x4b   :  { %269 = vmatpush.msra.mxu0 %v191_v46  ;;  %289 = vmatpush.msra.mxu1 %v192_v47  ;;  %v189_v9 = vld [vmem:[#allocation5 + $0x10] sm:$0xff]  ;;  %v396_v24 = vld [vmem:[#allocation8 + $0x1c8] sm:$0xff]  ;;  %v394_v28 = vld [vmem:[#allocation8 + $0x1b8] sm:$0xff] }
  0x4c   :  { %328 = vmatpush.msra.mxu3 %v198_v2  ;;  %309 = vmatpush.msra.mxu2 %v193_v5  ;;  %v357_v17 = vld [vmem:[#allocation8 + $0x90] sm:$0xff]  ;;  %v351_v29 = vld [vmem:[#allocation8 + $0x60] sm:$0xff]  ;;  %v360_v31 = vld [vmem:[#allocation8 + $0xa8] sm:$0xff] }
  0x4d   :  { %270 = vmatpush.msra.mxu0 %v187_v50  ;;  %290 = vmatpush.msra.mxu1 %v188_v51  ;;  %v389_v18 = vld [vmem:[#allocation8 + $0x190] sm:$0xff]  ;;  %v383_v30 = vld [vmem:[#allocation8 + $0x160] sm:$0xff]  ;;  %v392_v32 = vld [vmem:[#allocation8 + $0x1a8] sm:$0xff] }
  0x4e   :  { %271 = vmatmul.f32.vlgmr.msra.gmra.mxu0 %v1208_v52  ;;  %291 = vmatmul.f32.vlgmr.msra.gmra.mxu1 %v1208_v52  ;;  %v353_v25 = vld [vmem:[#allocation8 + $0x70] sm:$0xff]  ;;  %v358_v34 = vld [vmem:[#allocation8 + $0x98] sm:$0xff]  ;;  %v356_v36 = vld [vmem:[#allocation8 + $0x88] sm:$0xff] }
  0x4f   :  { %405 = vmatpush.msrb.mxu0 %v369_v55  ;;  %425 = vmatpush.msrb.mxu1 %v401_v56  ;;  %v385_v26 = vld [vmem:[#allocation8 + $0x170] sm:$0xff]  ;;  %v390_v35 = vld [vmem:[#allocation8 + $0x198] sm:$0xff]  ;;  %v388_v37 = vld [vmem:[#allocation8 + $0x188] sm:$0xff] }
  0x50   :  { %329 = vmatpush.msra.mxu3 %v194_v6  ;;  %310 = vmatpush.msra.mxu2 %v189_v9  ;;  %v349_v33 = vld [vmem:[#allocation8 + $0x50] sm:$0xff]  ;;  %v354_v38 = vld [vmem:[#allocation8 + $0x78] sm:$0xff]  ;;  %v352_v40 = vld [vmem:[#allocation8 + $0x68] sm:$0xff] }
  0x51   :  { %406 = vmatpush.msrb.mxu0 %v367_v59  ;;  %426 = vmatpush.msrb.mxu1 %v399_v60  ;;  %v386_v39 = vld [vmem:[#allocation8 + $0x178] sm:$0xff]  ;;  %v384_v41 = vld [vmem:[#allocation8 + $0x168] sm:$0xff]  ;;  %v347_v43 = vld [vmem:[#allocation8 + $0x40] sm:$0xff] }
  0x52   :  { %330 = vmatpush.msra.mxu3 %v190_v10  ;;  %445 = vmatpush.msrb.mxu2 %v370_v11  ;;  %v350_v42 = vld [vmem:[#allocation8 + $0x58] sm:$0xff]  ;;  %v381_v44 = vld [vmem:[#allocation8 + $0x150] sm:$0xff]  ;;  %v348_v45 = vld [vmem:[#allocation8 + $0x48] sm:$0xff] }
  0x53   :  { %407 = vmatpush.msrb.mxu0 %v365_v63  ;;  %427 = vmatpush.msrb.mxu1 %v397_v0  ;;  %v382_v46 = vld [vmem:[#allocation8 + $0x158] sm:$0xff]  ;;  %v345_v47 = vld [vmem:[#allocation8 + $0x30] sm:$0xff]  ;;  %v379_v48 = vld [vmem:[#allocation8 + $0x140] sm:$0xff] }
  0x54   :  { %465 = vmatpush.msrb.mxu3 %v402_v12  ;;  %446 = vmatpush.msrb.mxu2 %v368_v15  ;;  %v346_v49 = vld [vmem:[#allocation8 + $0x38] sm:$0xff]  ;;  %v380_v50 = vld [vmem:[#allocation8 + $0x148] sm:$0xff]  ;;  %v343_v51 = vld [vmem:[#allocation8 + $0x20] sm:$0xff] }
  0x55   :  { %408 = vmatpush.msrb.mxu0 %v363_v3  ;;  %428 = vmatpush.msrb.mxu1 %v395_v4  ;;  %v344_v53 = vld [vmem:[#allocation8 + $0x28] sm:$0xff]  ;;  %v378_v54 = vld [vmem:[#allocation8 + $0x138] sm:$0xff]  ;;  %v341_v55 = vld [vmem:[#allocation8 + $0x10] sm:$0xff] }
  0x56   :  { %466 = vmatpush.msrb.mxu3 %v400_v16  ;;  %447 = vmatpush.msrb.mxu2 %v366_v19  ;;  %v375_v56 = vld [vmem:[#allocation8 + $0x120] sm:$0xff]  ;;  %v342_v57 = vld [vmem:[#allocation8 + $0x18] sm:$0xff]  ;;  %v376_v58 = vld [vmem:[#allocation8 + $0x128] sm:$0xff] }
  0x57   :  { %409 = vmatpush.msrb.mxu0 %v361_v7  ;;  %429 = vmatpush.msrb.mxu1 %v393_v8  ;;  %v339_v59 = vld [vmem:[#allocation8] sm:$0xff]  ;;  %v373_v60 = vld [vmem:[#allocation8 + $0x110] sm:$0xff]  ;;  %v340_v61 = vld [vmem:[#allocation8 + $0x8] sm:$0xff] }
  0x58   :  { %467 = vmatpush.msrb.mxu3 %v398_v20  ;;  %448 = vmatpush.msrb.mxu2 %v364_v23  ;;  %v374_v62 = vld [vmem:[#allocation8 + $0x118] sm:$0xff]  ;;  %v371_v63 = vld [vmem:[#allocation8 + $0x100] sm:$0xff]  ;;  %v372_v0 = vld [vmem:[#allocation8 + $0x108] sm:$0xff] }
  0x59   :  { %410 = vmatpush.msrb.mxu0 %v359_v13  ;;  %430 = vmatpush.msrb.mxu1 %v391_v14  ;;  %v502_v1 = vld [vmem:[#allocation11 + $0x78] sm:$0xff]  ;;  %v501_v2 = vld [vmem:[#allocation11 + $0x70] sm:$0xff]  ;;  %v500_v4 = vld [vmem:[#allocation11 + $0x68] sm:$0xff] }
  0x5a   :  { %468 = vmatpush.msrb.mxu3 %v396_v24  ;;  %449 = vmatpush.msrb.mxu2 %v362_v27  ;;  %v518_v3 = vld [vmem:[#allocation11 + $0xf8] sm:$0xff]  ;;  %v517_v5 = vld [vmem:[#allocation11 + $0xf0] sm:$0xff]  ;;  %v516_v6 = vld [vmem:[#allocation11 + $0xe8] sm:$0xff] }
  0x5b   :  { %411 = vmatpush.msrb.mxu0 %v357_v17  ;;  %431 = vmatpush.msrb.mxu1 %v389_v18  ;;  %v499_v7 = vld [vmem:[#allocation11 + $0x60] sm:$0xff]  ;;  %v591_v9 = vld [vmem:[#allocation14 + $0xf0] sm:$0xff]  ;;  %v589_v11 = vld [vmem:[#allocation14 + $0xe0] sm:$0xff] }
  0x5c   :  { %469 = vmatpush.msrb.mxu3 %v394_v28  ;;  %450 = vmatpush.msrb.mxu2 %v360_v31  ;;  %v515_v8 = vld [vmem:[#allocation11 + $0xe0] sm:$0xff]  ;;  %v498_v10 = vld [vmem:[#allocation11 + $0x58] sm:$0xff]  ;;  %v497_v14 = vld [vmem:[#allocation11 + $0x50] sm:$0xff] }
  0x5d   :  { %412 = vmatpush.msrb.mxu0 %v355_v21  ;;  %432 = vmatpush.msrb.mxu1 %v387_v22  ;;  %v514_v12 = vld [vmem:[#allocation11 + $0xd8] sm:$0xff]  ;;  %v621_v16 = vld [vmem:[#allocation14 + $0x1e0] sm:$0xff]  ;;  %v513_v17 = vld [vmem:[#allocation11 + $0xd0] sm:$0xff] }
  0x5e   :  { %470 = vmatpush.msrb.mxu3 %v392_v32  ;;  %311 = vmatmul.f32.vlgmr.msra.gmra.mxu2 %v1208_v52  ;;  %v623_v13 = vld [vmem:[#allocation14 + $0x1f0] sm:$0xff]  ;;  %v585_v18 = vld [vmem:[#allocation14 + $0xc0] sm:$0xff]  ;;  %v495_v23 = vld [vmem:[#allocation11 + $0x40] sm:$0xff] }
  0x5f   :  { %413 = vmatpush.msrb.mxu0 %v353_v25  ;;  %433 = vmatpush.msrb.mxu1 %v385_v26  ;;  %v587_v15 = vld [vmem:[#allocation14 + $0xd0] sm:$0xff]  ;;  %v496_v19 = vld [vmem:[#allocation11 + $0x48] sm:$0xff]  ;;  %v511_v25 = vld [vmem:[#allocation11 + $0xc0] sm:$0xff] }
  0x60   :  { %451 = vmatpush.msrb.mxu2 %v358_v34  ;;  %471 = vmatpush.msrb.mxu3 %v390_v35  ;;  %v619_v20 = vld [vmem:[#allocation14 + $0x1d0] sm:$0xff]  ;;  %v512_v21 = vld [vmem:[#allocation11 + $0xc8] sm:$0xff]  ;;  %v493_v31 = vld [vmem:[#allocation11 + $0x30] sm:$0xff] }
  0x61   :  { %414 = vmatpush.msrb.mxu0 %v351_v29  ;;  %434 = vmatpush.msrb.mxu1 %v383_v30  ;;  %v583_v22 = vld [vmem:[#allocation14 + $0xb0] sm:$0xff]  ;;  %v617_v24 = vld [vmem:[#allocation14 + $0x1c0] sm:$0xff]  ;;  %v251_v35 = vld [vmem:[#allocation7] sm:$0xff] }
  0x62   :  { %331 = vmatmul.f32.vlgmr.msra.gmra.mxu3 %v1208_v52  ;;  %452 = vmatpush.msrb.mxu2 %v356_v36  ;;  %v377_v52 = vld [vmem:[#allocation8 + $0x130] sm:$0xff]  ;;  %v581_v26 = vld [vmem:[#allocation14 + $0xa0] sm:$0xff]  ;;  %v494_v27 = vld [vmem:[#allocation11 + $0x38] sm:$0xff] }
  0x63   :  { %415 = vmatpush.msrb.mxu0 %v349_v33  ;;  %472 = vmatpush.msrb.mxu3 %v388_v37  ;;  %v615_v28 = vld [vmem:[#allocation14 + $0x1b0] sm:$0xff]  ;;  %v613_v32 = vld [vmem:[#allocation14 + $0x1a0] sm:$0xff]  ;;  %v509_v33 = vld [vmem:[#allocation11 + $0xb0] sm:$0xff] }
  0x64   :  { %453 = vmatpush.msrb.mxu2 %v354_v38  ;;  %435 = vmatpush.msrb.mxu1 %v381_v44  ;;  %v510_v29 = vld [vmem:[#allocation11 + $0xb8] sm:$0xff]  ;;  %v577_v34 = vld [vmem:[#allocation14 + $0x80] sm:$0xff] }
  0x65   :  { %473 = vmatpush.msrb.mxu3 %v386_v39  ;;  %416 = vmatpush.msrb.mxu0 %v347_v43  ;;  %v579_v30 = vld [vmem:[#allocation14 + $0x90] sm:$0xff]  ;;  %v492_v36 = vld [vmem:[#allocation11 + $0x28] sm:$0xff] }
  0x66   :  { %454 = vmatpush.msrb.mxu2 %v352_v40  ;;  %436 = vmatpush.msrb.mxu1 %v379_v48  ;;  %v611_v37 = vld [vmem:[#allocation14 + $0x190] sm:$0xff]  ;;  %v508_v39 = vld [vmem:[#allocation11 + $0xa8] sm:$0xff] }
  0x67   :  { %474 = vmatpush.msrb.mxu3 %v384_v41  ;;  %417 = vmatpush.msrb.mxu0 %v345_v47  ;;  %v252_v38 = vld [vmem:[#allocation7 + $0x8] sm:$0xff]  ;;  %v491_v41 = vld [vmem:[#allocation11 + $0x20] sm:$0xff] }
  0x68   :  { %455 = vmatpush.msrb.mxu2 %v350_v42  ;;  %437 = vmatpush.msrb.mxu1 %v377_v52  ;;  %v575_v40 = vld [vmem:[#allocation14 + $0x70] sm:$0xff]  ;;  %v609_v42 = vld [vmem:[#allocation14 + $0x180] sm:$0xff] }
  0x69   :  { %475 = vmatpush.msrb.mxu3 %v382_v46  ;;  %418 = vmatpush.msrb.mxu0 %v343_v51  ;;  %v573_v46 = vld [vmem:[#allocation14 + $0x60] sm:$0xff]  ;;  %v506_v51 = vld [vmem:[#allocation11 + $0x98] sm:$0xff] }
  0x6a   :  { %456 = vmatpush.msrb.mxu2 %v348_v45  ;;  %438 = vmatpush.msrb.mxu1 %v375_v56  ;;  %v507_v45 = vld [vmem:[#allocation11 + $0xa0] sm:$0xff]  ;;  %v571_v52 = vld [vmem:[#allocation14 + $0x50] sm:$0xff]  ;;  %v569_v56 = vld [vmem:[#allocation14 + $0x40] sm:$0xff] }
  0x6b   :  { %476 = vmatpush.msrb.mxu3 %v380_v50  ;;  %419 = vmatpush.msrb.mxu0 %v341_v55  ;;  %v607_v50 = vld [vmem:[#allocation14 + $0x170] sm:$0xff]  ;;  %v505_v55 = vld [vmem:[#allocation11 + $0x90] sm:$0xff] }
  0x6c   :  { %457 = vmatpush.msrb.mxu2 %v346_v49  ;;  %439 = vmatpush.msrb.mxu1 %v373_v60  ;;  %v490_v49 = vld [vmem:[#allocation11 + $0x18] sm:$0xff] }
  0x6d   :  { %477 = vmatpush.msrb.mxu3 %v378_v54  ;;  %420 = vmatpush.msrb.mxu0 %v339_v59  ;;  %v605_v54 = vld [vmem:[#allocation14 + $0x160] sm:$0xff] }
  0x6e   :  { %458 = vmatpush.msrb.mxu2 %v344_v53  ;;  %440 = vmatpush.msrb.mxu1 %v371_v63  ;;  %v489_v53 = vld [vmem:[#allocation11 + $0x10] sm:$0xff]  ;;  %v504_v59 = vld [vmem:[#allocation11 + $0x88] sm:$0xff] }
  0x6f   :  { %478 = vmatpush.msrb.mxu3 %v376_v58  ;;  %520 = vmatpush.msra.mxu0 %v502_v1  ;;  %v603_v58 = vld [vmem:[#allocation14 + $0x150] sm:$0xff]  ;;  %v624_v1 = vld [vmem:[#allocation14 + $0x1f8] sm:$0xff] }
  0x70   :  { %459 = vmatpush.msrb.mxu2 %v342_v57  ;;  %540 = vmatpush.msra.mxu1 %v518_v3  ;;  %v488_v57 = vld [vmem:[#allocation11 + $0x8] sm:$0xff]  ;;  %v622_v3 = vld [vmem:[#allocation14 + $0x1e8] sm:$0xff] }
  0x71   :  { %479 = vmatpush.msrb.mxu3 %v374_v62  ;;  %521 = vmatpush.msra.mxu0 %v501_v2  ;;  %v503_v62 = vld [vmem:[#allocation11 + $0x80] sm:$0xff]  ;;  %v590_v2 = vld [vmem:[#allocation14 + $0xe8] sm:$0xff] }
  0x72   :  { %460 = vmatpush.msrb.mxu2 %v340_v61  ;;  %541 = vmatpush.msra.mxu1 %v517_v5  ;;  %v487_v61 = vld [vmem:[#allocation11] sm:$0xff] }
  0x73   :  { %480 = vmatpush.msrb.mxu3 %v372_v0  ;;  %522 = vmatpush.msra.mxu0 %v500_v4  ;;  %v592_v0 = vld [vmem:[#allocation14 + $0xf8] sm:$0xff] }
  0x74   :  { %542 = vmatpush.msra.mxu1 %v516_v6  ;;  %627 = vmatpush.msra.mxu2 %v591_v9  ;;  %v588_v4 = vld [vmem:[#allocation14 + $0xd8] sm:$0xff]  ;;  %v586_v6 = vld [vmem:[#allocation14 + $0xc8] sm:$0xff] }
  0x75   :  { %523 = vmatpush.msra.mxu0 %v499_v7  ;;  %647 = vmatpush.msra.mxu3 %v623_v13  ;;  %v620_v5 = vld [vmem:[#allocation14 + $0x1d8] sm:$0xff] }
  0x76   :  { %543 = vmatpush.msra.mxu1 %v515_v8  ;;  %628 = vmatpush.msra.mxu2 %v589_v11  ;;  %v584_v7 = vld [vmem:[#allocation14 + $0xb8] sm:$0xff]  ;;  %v582_v8 = vld [vmem:[#allocation14 + $0xa8] sm:$0xff]  ;;  %v254_v11 = vld [vmem:[#allocation7 + $0x18] sm:$0xff] }
  0x77   :  { %524 = vmatpush.msra.mxu0 %v498_v10  ;;  %648 = vmatpush.msra.mxu3 %v621_v16  ;;  %v253_v9 = vld [vmem:[#allocation7 + $0x10] sm:$0xff]  ;;  %v601_v16 = vld [vmem:[#allocation14 + $0x140] sm:$0xff] }
  0x78   :  { %544 = vmatpush.msra.mxu1 %v514_v12  ;;  %629 = vmatpush.msra.mxu2 %v587_v15  ;;  %v567_v15 = vld [vmem:[#allocation14 + $0x30] sm:$0xff] }
  0x79   :  { %525 = vmatpush.msra.mxu0 %v497_v14  ;;  %649 = vmatpush.msra.mxu3 %v619_v20  ;;  %v599_v20 = vld [vmem:[#allocation14 + $0x130] sm:$0xff] }
  0x7a   :  { %545 = vmatpush.msra.mxu1 %v513_v17  ;;  %630 = vmatpush.msra.mxu2 %v585_v18  ;;  %v580_v17 = vld [vmem:[#allocation14 + $0x98] sm:$0xff]  ;;  %v618_v18 = vld [vmem:[#allocation14 + $0x1c8] sm:$0xff] }
  0x7b   :  { %526 = vmatpush.msra.mxu0 %v496_v19  ;;  %650 = vmatpush.msra.mxu3 %v617_v24  ;;  %v565_v19 = vld [vmem:[#allocation14 + $0x20] sm:$0xff] }
  0x7c   :  { %546 = vmatpush.msra.mxu1 %v512_v21  ;;  %631 = vmatpush.msra.mxu2 %v583_v22  ;;  %v578_v21 = vld [vmem:[#allocation14 + $0x88] sm:$0xff]  ;;  %v616_v22 = vld [vmem:[#allocation14 + $0x1b8] sm:$0xff]  ;;  %v597_v24 = vld [vmem:[#allocation14 + $0x120] sm:$0xff] }
  0x7d   :  { %527 = vmatpush.msra.mxu0 %v495_v23  ;;  %651 = vmatpush.msra.mxu3 %v615_v28  ;;  %v563_v23 = vld [vmem:[#allocation14 + $0x10] sm:$0xff]  ;;  %v561_v28 = vld [vmem:[#allocation14] sm:$0xff] }
  0x7e   :  { %547 = vmatpush.msra.mxu1 %v511_v25  ;;  %632 = vmatpush.msra.mxu2 %v581_v26  ;;  %v576_v25 = vld [vmem:[#allocation14 + $0x78] sm:$0xff]  ;;  %v614_v26 = vld [vmem:[#allocation14 + $0x1a8] sm:$0xff] }
  0x7f   :  { %528 = vmatpush.msra.mxu0 %v494_v27  ;;  %652 = vmatpush.msra.mxu3 %v613_v32 }
  0x80   :  { %548 = vmatpush.msra.mxu1 %v510_v29  ;;  %633 = vmatpush.msra.mxu2 %v579_v30  ;;  %v595_v29 = vld [vmem:[#allocation14 + $0x110] sm:$0xff]  ;;  %v574_v30 = vld [vmem:[#allocation14 + $0x68] sm:$0xff] }
  0x81   :  { %529 = vmatpush.msra.mxu0 %v493_v31  ;;  %653 = vmatpush.msra.mxu3 %v611_v37  ;;  %v612_v31 = vld [vmem:[#allocation14 + $0x198] sm:$0xff] }
  0x82   :  { %549 = vmatpush.msra.mxu1 %v509_v33  ;;  %634 = vmatpush.msra.mxu2 %v577_v34  ;;  %v593_v33 = vld [vmem:[#allocation14 + $0x100] sm:$0xff]  ;;  %v572_v34 = vld [vmem:[#allocation14 + $0x58] sm:$0xff] }
  0x83   :  { %530 = vmatpush.msra.mxu0 %v492_v36  ;;  %654 = vmatpush.msra.mxu3 %v609_v42  ;;  %v570_v36 = vld [vmem:[#allocation14 + $0x48] sm:$0xff]  ;;  %v608_v37 = vld [vmem:[#allocation14 + $0x178] sm:$0xff] }
  0x84   :  { %550 = vmatpush.msra.mxu1 %v508_v39  ;;  %635 = vmatpush.msra.mxu2 %v575_v40  ;;  %v606_v39 = vld [vmem:[#allocation14 + $0x168] sm:$0xff]  ;;  %v564_v42 = vld [vmem:[#allocation14 + $0x18] sm:$0xff] }
  0x85   :  { %531 = vmatpush.msra.mxu0 %v491_v41  ;;  %655 = vmatpush.msra.mxu3 %v607_v50  ;;  %v566_v40 = vld [vmem:[#allocation14 + $0x28] sm:$0xff]  ;;  %v604_v41 = vld [vmem:[#allocation14 + $0x158] sm:$0xff] }
  0x86   :  { %551 = vmatpush.msra.mxu1 %v507_v45  ;;  %636 = vmatpush.msra.mxu2 %v573_v46  ;;  %v600_v45 = vld [vmem:[#allocation14 + $0x138] sm:$0xff]  ;;  %v598_v46 = vld [vmem:[#allocation14 + $0x128] sm:$0xff] }
  0x87   :  { %532 = vmatpush.msra.mxu0 %v490_v49  ;;  %656 = vmatpush.msra.mxu3 %v605_v54  ;;  %v403_v49 = vld [vmem:[#allocation10] sm:$0xff]  ;;  %v404_v54 = vld [vmem:[#allocation10 + $0x8] sm:$0xff] }
  0x88   :  { %552 = vmatpush.msra.mxu1 %v506_v51  ;;  %637 = vmatpush.msra.mxu2 %v571_v52 }
  0x89   :  { %533 = vmatpush.msra.mxu0 %v489_v53  ;;  %657 = vmatpush.msra.mxu3 %v603_v58 }
  0x8a   :  { %553 = vmatpush.msra.mxu1 %v505_v55  ;;  %638 = vmatpush.msra.mxu2 %v569_v56 }
  0x8b   :  { %534 = vmatpush.msra.mxu0 %v488_v57  ;;  %658 = vmatpush.msra.mxu3 %v601_v16 }
  0x8c   :  { %554 = vmatpush.msra.mxu1 %v504_v59  ;;  %639 = vmatpush.msra.mxu2 %v567_v15 }
  0x8d   :  { %535 = vmatpush.msra.mxu0 %v487_v61  ;;  %659 = vmatpush.msra.mxu3 %v599_v20 }
  0x8e   :  { %555 = vmatpush.msra.mxu1 %v503_v62  ;;  %640 = vmatpush.msra.mxu2 %v565_v19  ;;  %v519_v62 = vld [vmem:[#allocation13] sm:$0xff]  ;;  %v716_v19 = vld [vmem:[%s1233_s10] sm:$0xff] }
  0x8f   :  { %660 = vmatpush.msra.mxu3 %v597_v24 }
  0x90   :  { %641 = vmatpush.msra.mxu2 %v563_v23 }
  0x91   :  { %661 = vmatpush.msra.mxu3 %v595_v29 }
  0x92   :  { %642 = vmatpush.msra.mxu2 %v561_v28 }
  0x93   :  { %662 = vmatpush.msra.mxu3 %v593_v33 }
  0xcb   :  { %v272_v43 = vpop.f32.mrf.mxu0  ;;  %v292_v44 = vpop.f32.mrf.mxu1 }
  0xcc   :  { %v273_v47 = vadd.f32 %v272_v43, %v251_v35  ;;  %v293_v48 = vadd.f32 %v292_v44, %v252_v38  ;;  %v610_v35 = vld [vmem:[#allocation14 + $0x188] sm:$0xff]  ;;  %v568_v38 = vld [vmem:[#allocation14 + $0x38] sm:$0xff] }
  0xcd   :  { %v602_v43 = vld [vmem:[#allocation14 + $0x148] sm:$0xff] }
  0xce   :  { %775 = vtanh.f32 %v273_v47  ;;  %v562_v44 = vld [vmem:[#allocation14 + $0x8] sm:$0xff]  ;;  %v596_v47 = vld [vmem:[#allocation14 + $0x118] sm:$0xff] }
  0xcf   :  { %777 = vtanh.f32 %v293_v48  ;;  %v594_v48 = vld [vmem:[#allocation14 + $0x108] sm:$0xff] }
  0xd4   :  { %v776_v60 = vpop.eup %775 }
  0xd5   :  { %v778_v63 = vpop.eup %777  ;;  %421 = vmatmul.f32.vlgmr.msrb.gmra.mxu0 %v776_v60  ;;  %461 = vmatmul.f32.vlgmr.msrb.gmra.mxu2 %v776_v60 }
  0xd6   :  { %441 = vmatmul.f32.vlgmr.msrb.gmra.mxu1 %v778_v63  ;;  %481 = vmatmul.f32.vlgmr.msrb.gmra.mxu3 %v778_v63  ;;  %v625_v63 = vld [vmem:[#allocation16] sm:$0xff] }
  0xd7   :  { %667 = vmatpush.msrb.mxu0 %v592_v0  ;;  %687 = vmatpush.msrb.mxu1 %v624_v1 }
  0xd9   :  { %668 = vmatpush.msrb.mxu0 %v590_v2  ;;  %688 = vmatpush.msrb.mxu1 %v622_v3 }
  0xdb   :  { %669 = vmatpush.msrb.mxu0 %v588_v4  ;;  %689 = vmatpush.msrb.mxu1 %v620_v5 }
  0xdd   :  { %670 = vmatpush.msrb.mxu0 %v586_v6  ;;  %690 = vmatpush.msrb.mxu1 %v618_v18  ;;  %v626_v6 = vld [vmem:[#allocation16 + $0x8] sm:$0xff] }
  0xdf   :  { %671 = vmatpush.msrb.mxu0 %v584_v7  ;;  %691 = vmatpush.msrb.mxu1 %v616_v22 }
  0xe1   :  { %672 = vmatpush.msrb.mxu0 %v582_v8  ;;  %v312_v10 = vpop.f32.mrf.mxu2  ;;  %692 = vmatpush.msrb.mxu1 %v614_v26 }
  0xe2   :  { %v313_v13 = vadd.f32 %v312_v10, %v253_v9 }
  0xe3   :  { %673 = vmatpush.msrb.mxu0 %v580_v17  ;;  %693 = vmatpush.msrb.mxu1 %v612_v31 }
  0xe4   :  { %779 = vtanh.f32 %v313_v13  ;;  %v709_v13 = vld [vmem:[#allocation17] sm:$0xff] }
  0xe5   :  { %v332_v12 = vpop.f32.mrf.mxu3  ;;  %674 = vmatpush.msrb.mxu0 %v578_v21  ;;  %694 = vmatpush.msrb.mxu1 %v610_v35 }
  0xe6   :  { %v333_v14 = vadd.f32 %v332_v12, %v254_v11 }
  0xe7   :  { %675 = vmatpush.msrb.mxu0 %v576_v25  ;;  %695 = vmatpush.msrb.mxu1 %v608_v37 }
  0xe8   :  { %781 = vtanh.f32 %v333_v14  ;;  %v710_v14 = vld [vmem:[#allocation17 + $0x8] sm:$0xff] }
  0xe9   :  { %676 = vmatpush.msrb.mxu0 %v574_v30  ;;  %696 = vmatpush.msrb.mxu1 %v606_v39 }
  0xea   :  { %v780_v27 = vpop.eup %779 }
  0xeb   :  { %643 = vmatmul.f32.vlgmr.msra.gmra.mxu2 %v780_v27  ;;  %677 = vmatpush.msrb.mxu0 %v572_v34 }
  0xec   :  { %697 = vmatpush.msrb.mxu1 %v604_v41 }
  0xed   :  { %678 = vmatpush.msrb.mxu0 %v570_v36 }
  0xee   :  { %v782_v32 = vpop.eup %781  ;;  %698 = vmatpush.msrb.mxu1 %v602_v43 }
  0xef   :  { %663 = vmatmul.f32.vlgmr.msra.gmra.mxu3 %v782_v32  ;;  %679 = vmatpush.msrb.mxu0 %v568_v38 }
  0xf0   :  { %699 = vmatpush.msrb.mxu1 %v600_v45 }
  0xf1   :  { %680 = vmatpush.msrb.mxu0 %v566_v40 }
  0xf2   :  { %700 = vmatpush.msrb.mxu1 %v598_v46 }
  0xf3   :  { %681 = vmatpush.msrb.mxu0 %v564_v42 }
  0xf4   :  { %701 = vmatpush.msrb.mxu1 %v596_v47 }
  0xf5   :  { %682 = vmatpush.msrb.mxu0 %v562_v44 }
  0xf6   :  { %702 = vmatpush.msrb.mxu1 %v594_v48 }
 0x152   :  { %v422_v50 = vpop.f32.mrf.mxu0 }
 0x153   :  { %v423_v51 = vadd.f32 %v422_v50, %v403_v49  ;;  %v442_v52 = vpop.f32.mrf.mxu1 }
 0x155   :  { %v443_v53 = vadd.f32 %v442_v52, %v423_v51 }
 0x157   :  { %783 = vtanh.f32 %v443_v53 }
 0x158   :  { %v462_v55 = vpop.f32.mrf.mxu2 }
 0x159   :  { %v463_v56 = vadd.f32 %v462_v55, %v404_v54  ;;  %v482_v57 = vpop.f32.mrf.mxu3 }
 0x15b   :  { %v483_v58 = vadd.f32 %v482_v57, %v463_v56 }
 0x15d   :  { %v784_v59 = vpop.eup %783  ;;  %785 = vtanh.f32 %v483_v58 }
 0x15e   :  { %536 = vmatmul.f32.vlgmr.msra.gmra.mxu0 %v784_v59 }
 0x163   :  { %v786_v60 = vpop.eup %785 }
 0x164   :  { %556 = vmatmul.f32.vlgmr.msra.gmra.mxu1 %v786_v60 }
 0x166   :  { %683 = vmatmul.f32.vlgmr.msrb.gmra.mxu0 %v780_v27 }
 0x16c   :  { %703 = vmatmul.f32.vlgmr.msrb.gmra.mxu1 %v782_v32 }
 0x16e   :  { %v644_v0 = vpop.f32.mrf.mxu2 }
 0x16f   :  { %v645_v3 = vadd.f32 %v644_v0, %v625_v63 }
 0x172   :  { %v664_v5 = vpop.f32.mrf.mxu3 }
 0x173   :  { %v665_v8 = vadd.f32 %v664_v5, %v645_v3 }
 0x175   :  { %787 = vtanh.f32 %v665_v8 }
 0x17b   :  { %v788_v12 = vpop.eup %787 }
 0x17c   :  { %v711_v16 = vmul.f32 %v788_v12, %v709_v13 }
 0x1db   :  { %v537_v61 = vpop.f32.mrf.mxu0 }
 0x1dc   :  { %v538_v1 = vadd.f32 %v537_v61, %v519_v62 }
 0x1e1   :  { %v557_v2 = vpop.f32.mrf.mxu1 }
 0x1e2   :  { %v558_v4 = vadd.f32 %v557_v2, %v538_v1 }
 0x1e3   :  { %v684_v7 = vpop.f32.mrf.mxu0 }
 0x1e4   :  { %560 = vst [vmem:[#allocation19] sm:$0xff] %v558_v4  ;;  %v685_v9 = vadd.f32 %v684_v7, %v626_v6 }
 0x1e5   :  { %729 = dma.vmem_to_hbm [thread:$0]  %s725_s9, 128, %s727_s14, [#allocation4]  }
 0x1e9   :  { %v704_v10 = vpop.f32.mrf.mxu1 }
 0x1ea   :  { %v705_v11 = vadd.f32 %v704_v10, %v685_v9 }
 0x1ec   :  { %789 = vtanh.f32 %v705_v11 }
 0x1f2   :  { %v790_v15 = vpop.eup %789 }
 0x1f3   :  { %v712_v17 = vmul.f32 %v790_v15, %v710_v14 }
 0x1f5   :  { %v713_v18 = vadd.f32 %v712_v17, %v711_v16 }
 0x1f7   :  { %714 = vadd.xlane.f32.xlu0 %v713_v18 }
 0x26a   :  { %v715_v20 = vpop.xlane.xlu0 %714 }
 0x26b   :  { %v717_v21 = vadd.f32 %v716_v19, %v715_v20 }
 0x26d   :  { %718 = vst [vmem:[#allocation20] sm:$0xff] %v717_v21 }
 0x26e   :  { %740 = dma.vmem_to_hbm [thread:$0]  %s736_s18, 128, %s738_s11, [#allocation21]  }
 0x26f   :  { %1091 = dma.done.wait [#allocation4], 128  }
 0x270   :  { %1092 = vsyncadd [#allocation4], 4294967168 }
 0x271   :  { %1093 = dma.done.wait [#allocation21], 128  }
 0x272   :  { %1094 = vsyncadd [#allocation21], 4294967168 }
 0x273   :  { %749 = vsyncpa [#allocation3], 1 }
 0x274   :  { %750 = vsyncpa [#allocation6], 1 }
 0x275   :  { %751 = vsyncpa [#allocation9], 1 }
 0x276   :  { %752 = vsyncpa [#allocation12], 1 }
 0x277   :  { %753 = vsyncpa [#allocation15], 1 }
 0x278   :  { %754 = vsyncpa [#allocation18], 1 }
 0x279   :  { %755 = vsyncpa [#allocation4], 1 }
 0x27a   :  { %756 = vsyncpa [#allocation21], 1 }

</bundles_post_ra>
